<compile_context>
chip_gen: v7x
topology: tpu7x:2x2x1
jax: 0.10.0
libtpu: 0.0.40
codegen_flags: <defaults>
</compile_context>

<pallas_src>
import functools

import jax
import jax.numpy as jnp
from jax.experimental import pallas as pl
from jax.experimental.pallas import tpu as pltpu


def _round_up(x, m):
    return (x + m - 1) // m * m


def space_to_depth(x, b):
    """Reference-only helper: torch.nn.functional.unfold(x, b, stride=b) + view.

    out[n, c*b*b + kh*b + kw, ho, wo] = x[n, c, ho*b + kh, wo*b + kw]
    """
    N, C, H, W = x.shape
    Ho, Wo = H // b, W // b
    y = x.reshape(N, C, Ho, b, Wo, b)            # (n, c, ho, kh, wo, kw)
    y = y.transpose(0, 1, 3, 5, 2, 4)            # (n, c, kh, kw, ho, wo)
    return y.reshape(N, C * b * b, Ho, Wo)


def focus_matmul_bias_silu_kernel(x_ref, w_ref, bias_ref, o_ref):
    # x_ref:    (1, Cin, TP)  activation slab tile (lane axis = spatial positions)
    # w_ref:    (Cout, Cin)   weights with the inference-BN scale folded in
    # bias_ref: (Cout, 1)     f32 folded BN bias
    # o_ref:    (1, Cout, TP) NCHW output tile, written lane-dense
    y = jnp.dot(w_ref[...], x_ref[0], preferred_element_type=jnp.float32)  # (Cout, TP)
    y = y + bias_ref[...]                                                  # folded BN bias
    # SiLU. approx=False keeps exact numerics; flip to approx=True to push the
    # divide onto the EUP if the VPU epilogue ever becomes the binding slot
    # (mem-bound today, so neutral).
    sig = pl.reciprocal(1.0 + jnp.exp(-y), approx=False)
    o_ref[0] = (y * sig).astype(o_ref.dtype)


def focus_forward(x, conv_w, gamma, beta, run_mean, run_var, *, b, eps=1e-5, tp=8192):
    """Focus.forward: space_to_depth(x, b) -> 1x1 Conv (no bias) -> BN -> SiLU.

    Returns NCHW (N, Cout, H//b, W//b), produced natively by the kernel.
    """
    N, C, H, W = x.shape
    Ho, Wo = H // b, W // b
    Cin = C * b * b
    P = Ho * Wo
    Cout = conv_w.shape[0]
    assert conv_w.shape == (Cout, Cin, 1, 1)

    # --- glue: ONE fused rearrangement pass -> (N, Cin, P) slab ---------------
    # slab[n, c*b*b + kh*b + kw, ho*Wo + wo] = x[n, c, ho*b+kh, wo*b+kw]
    # (unfold channel ordering, matching the PyTorch space_to_depth above).
    xslab = (x.reshape(N, C, Ho, b, Wo, b)
               .transpose(0, 1, 3, 5, 2, 4)      # (n, c, kh, kw, ho, wo)
               .reshape(N, Cin, P))

    # Fold BatchNorm (inference): scale into the weights, bias stays f32.
    inv_std = jax.lax.rsqrt(run_var.astype(jnp.float32) + eps)
    scale = gamma.astype(jnp.float32) * inv_std                              # (Cout,)
    bias = (beta.astype(jnp.float32)
            - run_mean.astype(jnp.float32) * scale).reshape(Cout, 1)         # (Cout,1) f32
    wt = (conv_w.reshape(Cout, Cin).astype(jnp.float32)
          * scale[:, None]).astype(x.dtype)                                  # (Cout, Cin)

    # --- lane tiling over P ----------------------------------------------------
    tp_cap = max(128, (tp // 128) * 128)
    if N == 1 and P > 256:
        # Guarantee >= 2 blocks on the parallel axes so v7x's 2 TCs both work.
        tp_cap = min(tp_cap, _round_up(pl.cdiv(P, 2), 128))
    if P <= tp_cap:
        tp_eff = P                     # full-dim block (always layout-legal)
    else:
        tp_eff = tp_cap                # 128-aligned; ragged last tile is masked
    grid_p = pl.cdiv(P, tp_eff)

    out = pl.pallas_call(
        focus_matmul_bias_silu_kernel,
        out_shape=jax.ShapeDtypeStruct((N, Cout, P), x.dtype),
        grid_spec=pltpu.PrefetchScalarGridSpec(
            num_scalar_prefetch=0,
            grid=(N, grid_p),
            in_specs=[
                pl.BlockSpec((1, Cin, tp_eff), lambda n, pi: (n, 0, pi)),
                pl.BlockSpec((Cout, Cin), lambda n, pi: (0, 0)),
                pl.BlockSpec((Cout, 1), lambda n, pi: (0, 0)),
            ],
            out_specs=pl.BlockSpec((1, Cout, tp_eff), lambda n, pi: (n, 0, pi)),
        ),
        compiler_params=pltpu.CompilerParams(
            dimension_semantics=("parallel", "parallel"),   # megacore shards N x P-tiles
            vmem_limit_bytes=32 * 1024 * 1024,              # safe on v5e/v6e/v7x
            allow_input_fusion=[True, False, False],        # let XLA fuse the slab glue
        ),
    )(xslab, wt, bias)

    return out.reshape(N, Cout, Ho, Wo)          # free reshape; already NCHW


def focus_reference(x, conv_w, gamma, beta, run_mean, run_var, *, b, eps=1e-5):
    y = space_to_depth(x, b)                               # (N, Cin, Ho, Wo)
    Cout, Cin = conv_w.shape[0], conv_w.shape[1]
    conv = jnp.einsum("nihw,oi->nohw", y.astype(jnp.float32),
                      conv_w.reshape(Cout, Cin).astype(jnp.float32))
    inv_std = 1.0 / jnp.sqrt(run_var + eps)
    z = conv * (gamma * inv_std)[None, :, None, None] + \
        (beta - run_mean * gamma * inv_std)[None, :, None, None]
    return (z * jax.nn.sigmoid(z)).astype(x.dtype)


if __name__ == "__main__":
    # Module config: Focus(c1=16, c2=32, b=2, k=1) — input x has c1/b^2 = 4 channels.
    N, C, H, W = 2, 4, 16, 16
    b = 2
    c1 = C * b * b      # 16 — conv input channels after space_to_depth
    c2 = 32

    key = jax.random.PRNGKey(0)
    kx, kw, kg, kb, km, kv = jax.random.split(key, 6)

    x = jax.random.normal(kx, (N, C, H, W), dtype=jnp.float32)

    # Deterministic synthetic parameters (Conv2d bias=False, kaiming-like std;
    # BN affine + running stats).
    fan_in = c1  # k=1 kernel
    conv_w = jax.random.normal(kw, (c2, c1, 1, 1), dtype=jnp.float32) * jnp.sqrt(2.0 / fan_in)
    gamma = 1.0 + 0.1 * jax.random.normal(kg, (c2,), dtype=jnp.float32)
    beta = 0.1 * jax.random.normal(kb, (c2,), dtype=jnp.float32)
    run_mean = 0.1 * jax.random.normal(km, (c2,), dtype=jnp.float32)
    run_var = jnp.abs(1.0 + 0.1 * jax.random.normal(kv, (c2,), dtype=jnp.float32))

    fwd = jax.jit(functools.partial(focus_forward, b=b))   # jit so the glue stays one fused pass
    out = fwd(x, conv_w, gamma, beta, run_mean, run_var)
    out = jax.block_until_ready(out)

    ref = focus_reference(x, conv_w, gamma, beta, run_mean, run_var, b=b)
    assert out.shape == (N, c2, H // b, W // b), out.shape
    assert jnp.allclose(out, ref, atol=1e-4, rtol=1e-4), float(jnp.max(jnp.abs(out - ref)))

    print("KERNEL_OK")
</pallas_src>

<mosaic_0001>
module attributes {stable_mosaic.version = 11 : i64} {
  func.func @focus_matmul_bias_silu_kernel(%arg0: i32, %arg1: i32, %arg2: memref<1x16x64xf32, #tpu.memory_space<vmem>>, %arg3: memref<32x16xf32, #tpu.memory_space<vmem>>, %arg4: memref<32x1xf32, #tpu.memory_space<vmem>>, %arg5: memref<1x32x64xf32, #tpu.memory_space<vmem>>) attributes {dimension_semantics = [#tpu.dimension_semantics<parallel>, #tpu.dimension_semantics<parallel>], iteration_bounds = array<i64: 2, 1>, scalar_prefetch = 0 : i64, scratch_operands = 0 : i64, tpu.core_type = #tpu.core_type<tc>, window_params = [{transform_indices = @transform_0, window_bounds = array<i64: 1, 16, 64>}, {pipeline_mode = #tpu.pipeline_mode<synchronous>, transform_indices = @transform_1, window_bounds = array<i64: 32, 16>}, {pipeline_mode = #tpu.pipeline_mode<synchronous>, transform_indices = @transform_2, window_bounds = array<i64: 32, 1>}, {transform_indices = @transform_3, window_bounds = array<i64: 1, 32, 64>}]} {
    %c0 = arith.constant 0 : index
    %c0_0 = arith.constant 0 : index
    %0 = vector.load %arg3[%c0, %c0_0] : memref<32x16xf32, #tpu.memory_space<vmem>>, vector<32x16xf32>
    %c0_1 = arith.constant 0 : index
    %c0_2 = arith.constant 0 : index
    %c0_3 = arith.constant 0 : index
    %1 = vector.load %arg2[%c0_1, %c0_2, %c0_3] : memref<1x16x64xf32, #tpu.memory_space<vmem>>, vector<1x16x64xf32>
    %2 = vector.shape_cast %1 : vector<1x16x64xf32> to vector<16x64xf32>
    %cst = arith.constant dense<0.000000e+00> : vector<32x64xf32>
    %3 = tpu.matmul %0, %2, %cst {dimension_numbers = #tpu.dot_dimension_numbers<[1], [0], [0], [1], [0, 0, 1, 1], [], []>} : vector<32x16xf32>, vector<16x64xf32>, vector<32x64xf32> -> vector<32x64xf32>
    %c0_4 = arith.constant 0 : index
    %c0_5 = arith.constant 0 : index
    %4 = vector.load %arg4[%c0_4, %c0_5] : memref<32x1xf32, #tpu.memory_space<vmem>>, vector<32x1xf32>
    %5 = vector.broadcast %4 : vector<32x1xf32> to vector<32x64xf32>
    %6 = arith.addf %3, %5 : vector<32x64xf32>
    %cst_6 = arith.constant 0.000000e+00 : f32
    %7 = vector.broadcast %cst_6 : f32 to vector<32x64xf32>
    %8 = arith.subf %7, %6 : vector<32x64xf32>
    %9 = math.exp %8 : vector<32x64xf32>
    %cst_7 = arith.constant 1.000000e+00 : f32
    %10 = vector.broadcast %cst_7 : f32 to vector<32x64xf32>
    %11 = arith.addf %10, %9 : vector<32x64xf32>
    %12 = tpu.reciprocal %11 : vector<32x64xf32> -> vector<32x64xf32>
    %13 = arith.mulf %6, %12 : vector<32x64xf32>
    %c0_8 = arith.constant 0 : index
    %c0_9 = arith.constant 0 : index
    %c0_10 = arith.constant 0 : index
    %14 = vector.load %arg5[%c0_8, %c0_9, %c0_10] : memref<1x32x64xf32, #tpu.memory_space<vmem>>, vector<1x32x64xf32>
    %15 = vector.shape_cast %14 : vector<1x32x64xf32> to vector<32x64xf32>
    %16 = vector.shape_cast %13 : vector<32x64xf32> to vector<1x32x64xf32>
    tpu.vector_store %arg5[%c0_8, %c0_9, %c0_10], %16 {strides = array<i32>} : memref<1x32x64xf32, #tpu.memory_space<vmem>>, vector<1x32x64xf32>,
    return
  }
  func.func @transform_0(%arg0: i32, %arg1: i32) -> (i32, i32, i32) {
    %c0_i32 = arith.constant 0 : i32
    %c0_i32_0 = arith.constant 0 : i32
    return %arg0, %c0_i32, %arg1 : i32, i32, i32
  }
  func.func @transform_1(%arg0: i32, %arg1: i32) -> (i32, i32) {
    %c0_i32 = arith.constant 0 : i32
    %c0_i32_0 = arith.constant 0 : i32
    %c0_i32_1 = arith.constant 0 : i32
    return %c0_i32, %c0_i32_0 : i32, i32
  }
  func.func @transform_2(%arg0: i32, %arg1: i32) -> (i32, i32) {
    %c0_i32 = arith.constant 0 : i32
    %c0_i32_0 = arith.constant 0 : i32
    %c0_i32_1 = arith.constant 0 : i32
    return %c0_i32, %c0_i32_0 : i32, i32
  }
  func.func @transform_3(%arg0: i32, %arg1: i32) -> (i32, i32, i32) {
    %c0_i32 = arith.constant 0 : i32
    %c0_i32_0 = arith.constant 0 : i32
    return %arg0, %c0_i32, %arg1 : i32, i32, i32
  }
}

</mosaic_0001>

<bundles_post_ra>
// kernel: focus_forward.1
= control target key start
LH: loop header
LB: loop body
LE: loop exit
PB: predicated region body
PF: predicated region fallthrough
CT: control target
= control target key end

     0   :  { %s569_s12 = smov 0   ;;  %s571_s13 = smov 0   ;;  %s634_s0 = inlined_call_operand.vmem [shape: f32[2,16,64], index: 0, kind: input, shape index: {}]   ;;  %s635_s1 = inlined_call_operand.vmem [shape: f32[32,16], index: 1, kind: input, shape index: {}]   ;;  %s636_s2 = inlined_call_operand.vmem [shape: f32[32,1], index: 2, kind: input, shape index: {}]   ;;  %s637_s3 = inlined_call_operand.vmem [shape: f32[2,32,64], index: 3, kind: output, shape index: {}]  }
   0x1   :  { %s573_s14 = smov 0  }
   0x2 LB: > { %s25_s15 = sadd.s32 1, %s542_s13  ;;  %p446_p0 = scmp.ge.s32.totalorder %s546_s14, 1  ;;  %s546_s14 = sphi %s573_s14, %s13_s14   ;;  %s542_s13 = sphi %s571_s13, %s639_s13   ;;  %s538_s12 = sphi %s569_s12, %s638_s12  }
   0x3   : > { %p27_p1 = scmp.ge.s32.totalorder %s25_s15, 2  ;;  %p156_p2 = scmp.lt.s32.totalorder %s546_s14, 3 }
   0x5   : > { %s641_s15 = smov (%p27_p1, %s25_s15), 0  ;;  %p157_p3 = pnand %p446_p0, %p156_p2 }
   0x6   : > { %p186_p4 = scmp.lt.s32.totalorder (!%p157_p3), %s538_s12, 1  ;;  %v202_v0 = vld [vmem:[%s635_s1] sm:$0xff] (!%p157_p3)  ;;  %vm232_vm0 = vcmask (!%p157_p3), 130048   ;;  %v204_v1 = vld [vmem:[%s635_s1 + $0x10] sm:$0xff] (!%p157_p3)  ;;  %v548_v4 = vmov (!%p157_p3), 0   ;;  %v211_v5 = vld [vmem:[%s636_s2 + $0x18] sm:$0xff] (!%p157_p3) }
   0x7   : > { %160 = sbr.rel (%p157_p3) target bundleno = 272 (0x110), region = 32  ;;  %469 = vmatprep.mubr.msk.f32.mxu0 (!%p157_p3), %vm232_vm0, %v202_v0  ;;  %472 = vmatprep.mubr.msk.f32.mxu1 (!%p157_p3), %vm232_vm0, %v204_v1  ;;  %v210_v2 = vld [vmem:[%s636_s2 + $0x10] sm:$0xff] (!%p157_p3)  ;;  %v208_v3 = vld [vmem:[%s636_s2] sm:$0xff] (!%p157_p3)  ;;  %v209_v6 = vld [vmem:[%s636_s2 + $0x8] sm:$0xff] (!%p157_p3)  ;;  %vm354_vm1 = vcmask (!%p157_p3), 523264  }
   0x8   : > { %507 = vset.pattern.permute.xlu1 (!%p157_p3), %v548_v4  ;;  %506 = vset.pattern.permute.xlu0 (!%p157_p3), %v548_v4  ;;  %v203_v10 = vld [vmem:[%s635_s1 + $0x8] sm:$0xff] (!%p157_p3)  ;;  %v205_v11 = vld [vmem:[%s635_s1 + $0x18] sm:$0xff] (!%p157_p3) }
   0x9   : > { %224 = vperm.xlu1 (!%p157_p3), %507, %v210_v2   ;;  %214 = vperm.xlu0 (!%p157_p3), %506, %v208_v3  }
   0xd   : > { %229 = vperm.xlu1 (!%p157_p3), %507, %v211_v5   ;;  %219 = vperm.xlu0 (!%p157_p3), %506, %v209_v6  }
   0xe   : > { %s643_s12 = smov (!%p186_p4, %s538_s12), 1 }
   0xf   : > { %s457_s24 = sshll.u32 %s643_s12, 4  ;;  %s458_s9 = sshll.u32 %s643_s12, 5 }
  0x10   : > { %s193_s4 = scalar_lea.vmem %s634_s0, %s457_s24  ;;  %s201_s16 = scalar_lea.vmem %s637_s3, %s458_s9 }
  0x11   : > { %v206_v7 = vld [vmem:[%s193_s4] sm:$0xff]  ;;  %v207_v8 = vld [vmem:[%s193_s4 + $0x8] sm:$0xff] }
  0x12   : > { %v475_v9 = vpack.c.bf16 %v207_v8, %v206_v7 }
  0x14   : > { %476 = vmatprep.subr.bf16.mxu0 %v475_v9  ;;  %479 = vmatprep.subr.bf16.mxu1 %v475_v9 }
  0x15   : > { %478 = vmatpush3.bf16.msra.mxu0 %v475_v9  ;;  %480 = vmatpush3.bf16.msra.mxu1 %v475_v9 }
  0x18   : > { %470 = vmatmul.mubr.msk.f32.vlgmr.msra.gmra.mrb[0].mxu0 %vm232_vm0, %v203_v10  ;;  %473 = vmatmul.mubr.msk.f32.vlgmr.msra.gmra.mrb[0].mxu1 %vm232_vm0, %v205_v11 }
  0x88   : > { %v225_v12 = vpop.permute.xlu1 %224  ;;  %v215_v13 = vpop.permute.xlu0 %214 }
  0x8c   : > { %v230_v14 = vpop.permute.xlu1 %229  ;;  %v220_v15 = vpop.permute.xlu0 %219 }
  0xeb   : > { %v471_v16 = vpop.f32.mrb[0].mxu0  ;;  %v474_v17 = vpop.f32.mrb[0].mxu1 }
  0xec   : > { %v317_v18 = vadd.f32 %v471_v16, %v220_v15  ;;  %v327_v19 = vadd.f32 %v474_v17, %v230_v14  ;;  %v311_v20 = vpop.f32.mrb[1].mxu0  ;;  %v321_v21 = vpop.f32.mrb[1].mxu1 }
  0xed   : > { %v312_v22 = vadd.f32 %v311_v20, %v215_v13  ;;  %v322_v23 = vadd.f32 %v321_v21, %v225_v12 }
  0xee   : > { %v331_v24 = vsub.f32 0.0, %v317_v18  ;;  %v333_v25 = vsub.f32 0.0, %v327_v19 }
  0xef   : > { %v330_v26 = vsub.f32 0.0, %v312_v22  ;;  %v332_v27 = vsub.f32 0.0, %v322_v23 }
  0xf0   : > { %v336_v28 = vmul.f32 1.442695, %v331_v24  ;;  %v340_v29 = vmul.f32 1.442695, %v333_v25 }
  0xf1   : > { %v334_v30 = vmul.f32 1.442695, %v330_v26  ;;  %v338_v31 = vmul.f32 1.442695, %v332_v27 }
  0xf2   : > { %508 = vpow2.f32 %v336_v28 }
  0xf3   : > { %510 = vpow2.f32 %v340_v29 }
  0xf4   : > { %512 = vpow2.f32 %v334_v30 }
  0xf5   : > { %514 = vpow2.f32 %v338_v31 }
  0xfc   : > { %v509_v32 = vpop.eup %508 }
  0xfd   : > { %v511_v33 = vpop.eup %510  ;;  %v343_v34 = vadd.f32 1.0, %v509_v32 }
  0xfe   : > { %v513_v35 = vpop.eup %512  ;;  %v345_v36 = vadd.f32 1.0, %v511_v33 }
  0xff   : > { %v515_v37 = vpop.eup %514  ;;  %516 = vrcp.f32 %v343_v34  ;;  %v342_v38 = vadd.f32 1.0, %v513_v35 }
 0x100   : > { %518 = vrcp.f32 %v345_v36  ;;  %v344_v39 = vadd.f32 1.0, %v515_v37 }
 0x101   : > { %520 = vrcp.f32 %v342_v38 }
 0x102   : > { %522 = vrcp.f32 %v344_v39 }
 0x109   : > { %v517_v40 = vpop.eup %516 }
 0x10a   : > { %v519_v41 = vpop.eup %518  ;;  %v351_v42 = vmul.f32 %v517_v40, %v317_v18 }
 0x10b   : > { %v521_v43 = vpop.eup %520  ;;  %v353_v44 = vmul.f32 %v519_v41, %v327_v19 }
 0x10c   : > { %v523_v45 = vpop.eup %522  ;;  %356 = vst.msk [vmem:[%s201_s16 + $0x8] sm:$0xff] %vm354_vm1, %v351_v42  ;;  %v350_v46 = vmul.f32 %v521_v43, %v312_v22 }
 0x10d   : > { %358 = vst.msk [vmem:[%s201_s16 + $0x18] sm:$0xff] %vm354_vm1, %v353_v44  ;;  %v352_v47 = vmul.f32 %v523_v45, %v322_v23 }
 0x10e   : > { %355 = vst.msk [vmem:[%s201_s16] sm:$0xff] %vm354_vm1, %v350_v46 }
 0x10f   : > { %357 = vst.msk [vmem:[%s201_s16 + $0x10] sm:$0xff] %vm354_vm1, %v352_v47 }
 0x110 PF: > { %s13_s14 = sadd.s32 1, %s546_s14   ;;  %s638_s12 = smov %s542_s13 }
 0x111   : > { %p10_p5 = scmp.ge.s32.totalorder %s13_s14, 4   ;;  %s639_s13 = smov %s641_s15 }
 0x113   :  { %12 = sbr.rel (!%p10_p5) target bundleno = 2 (0x2), region = 62 }

</bundles_post_ra>
